<compile_context>
chip_gen: v7x
topology: tpu7x:2x2x1
jax: 0.10.0
libtpu: 0.0.40
codegen_flags: <defaults>
</compile_context>

<pallas_src>
import math
import numpy as np
import jax
import jax.numpy as jnp
from jax import lax
from jax.experimental import pallas as pl
from jax.experimental.pallas import tpu as pltpu

# ----------------------------- config ---------------------------------------
B, S, E = 2, 8, 32          # batch, seq, input_dim (= output_dim for residual)
NUM_HEAD = 4
HEAD_DIM = E // NUM_HEAD
HIDDEN = 64                 # FFN hidden_dim
LN_EPS = 1e-5
NEG_INF = -1e9


def _layernorm(x, gamma, beta):
    mu = jnp.mean(x, axis=-1, keepdims=True)
    var = jnp.mean((x - mu) ** 2, axis=-1, keepdims=True)
    return (x - mu) * lax.rsqrt(var + LN_EPS) * gamma + beta


# ----------------------------- kernel ----------------------------------------
def self_interaction_kernel(
    x_ref, kp_ref, am_ref,
    wqkv_ref, bqkv_ref,
    wo_ref, bo_ref,
    g1_ref, be1_ref,
    w1_ref, b1_ref, w2_ref, b2_ref,
    g2_ref, be2_ref,
    out_ref,
    attn_sc,
):
    x = x_ref[...]                    # (B*S, E) fused-batch activation
    am = am_ref[...]                  # (S, S)   additive attention mask

    # ---- fused QKV projection: one MXU push with 3E output lanes ----
    qkv = jnp.dot(x, wqkv_ref[...], preferred_element_type=jnp.float32) + bqkv_ref[...]
    q = qkv[:, :E] * (1.0 / math.sqrt(HEAD_DIM))   # fold softmax scale into q once
    k = qkv[:, E:2 * E]
    v = qkv[:, 2 * E:]

    # ---- attention: tiny fully-unrolled per-batch / per-head loops ----
    for b in range(B):
        r0 = b * S
        qb = q[r0:r0 + S, :]
        kb = k[r0:r0 + S, :]
        vb = v[r0:r0 + S, :]
        # combined additive mask, hoisted out of the head loop (one add / batch)
        cmask = am + kp_ref[b:b + 1, :]            # (S, S) via sublane broadcast
        for h in range(NUM_HEAD):
            lo = h * HEAD_DIM
            qh = qb[:, lo:lo + HEAD_DIM]
            kh = kb[:, lo:lo + HEAD_DIM]
            vh = vb[:, lo:lo + HEAD_DIM]
            # q @ k^T without materializing a transpose (last-dim contraction)
            s = lax.dot_general(qh, kh, (((1,), (1,)), ((), ())),
                                preferred_element_type=jnp.float32)
            s = s + cmask
            s = s - jnp.max(s, axis=-1, keepdims=True)
            p = jnp.exp(s)
            p = p * pl.reciprocal(jnp.sum(p, axis=-1, keepdims=True), approx=True)
            # write head output into its static lane slice of the scratch
            attn_sc[r0:r0 + S, lo:lo + HEAD_DIM] = jnp.dot(
                p, vh, preferred_element_type=jnp.float32)

    # ---- output projection ----
    attn = jnp.dot(attn_sc[...], wo_ref[...],
                   preferred_element_type=jnp.float32) + bo_ref[...]

    # ---- residual + LayerNorm 1 ----
    h1 = _layernorm(x + attn, g1_ref[...], be1_ref[...])

    # ---- FFN (Linear -> ReLU -> Linear) ----
    ff = jnp.dot(h1, w1_ref[...], preferred_element_type=jnp.float32) + b1_ref[...]
    ff = jnp.maximum(ff, 0.0)
    ff = jnp.dot(ff, w2_ref[...], preferred_element_type=jnp.float32) + b2_ref[...]

    # ---- residual + LayerNorm 2 ----
    out_ref[...] = _layernorm(h1 + ff, g2_ref[...], be2_ref[...])


# ----------------------------- wrapper ----------------------------------------
def self_interaction_block(query, query_padding_mask, attn_mask, params):
    """query: (B,S,E) f32; query_padding_mask: (B,S) bool (True = pad);
    attn_mask: (S,S) f32 additive mask."""
    (wq, wk, wv, bq, bk, bv, wo, bo, g1, be1, w1, b1, w2, b2, g2, be2) = params

    # trace-time fusion of the three projections into one matmul
    wqkv = jnp.concatenate([wq, wk, wv], axis=1)     # (E, 3E)
    bqkv = jnp.concatenate([bq, bk, bv], axis=1)     # (1, 3E)
    kp_bias = jnp.where(query_padding_mask, NEG_INF, 0.0).astype(jnp.float32)  # (B,S)
    x = query.reshape(B * S, E)                      # fold batch into rows

    operands = (x, kp_bias, attn_mask, wqkv, bqkv, wo, bo,
                g1, be1, w1, b1, w2, b2, g2, be2)

    out = pl.pallas_call(
        self_interaction_kernel,
        out_shape=jax.ShapeDtypeStruct((B * S, E), jnp.float32),
        in_specs=[pl.BlockSpec(memory_space=pltpu.MemorySpace.VMEM)
                  for _ in operands],
        out_specs=pl.BlockSpec(memory_space=pltpu.MemorySpace.VMEM),
        scratch_shapes=[pltpu.VMEM((B * S, E), jnp.float32)],
    )(*operands)
    return out.reshape(B, S, E)


# ----------------------------- reference (pure JAX) --------------------------
def reference(query, query_padding_mask, attn_mask, params):
    (wq, wk, wv, bq, bk, bv, wo, bo, g1, be1, w1, b1, w2, b2, g2, be2) = params
    kp_bias = jnp.where(query_padding_mask, NEG_INF, 0.0)          # (B, S)
    q = query @ wq + bq
    k = query @ wk + bk
    v = query @ wv + bv

    def split(t):  # (B,S,E) -> (B,H,S,Dh)
        return t.reshape(B, S, NUM_HEAD, HEAD_DIM).transpose(0, 2, 1, 3)

    qh, kh, vh = split(q), split(k), split(v)
    s = jnp.einsum("bhqd,bhkd->bhqk", qh, kh) / math.sqrt(HEAD_DIM)
    s = s + attn_mask[None, None, :, :] + kp_bias[:, None, None, :]
    p = jax.nn.softmax(s, axis=-1)
    o = jnp.einsum("bhqk,bhkd->bhqd", p, vh).transpose(0, 2, 1, 3).reshape(B, S, E)
    o = o @ wo + bo
    h1 = _layernorm(query + o, g1, be1)
    ff = jnp.maximum(h1 @ w1 + b1, 0.0) @ w2 + b2
    return _layernorm(h1 + ff, g2, be2)


if __name__ == "__main__":
    key = jax.random.PRNGKey(0)
    ks = jax.random.split(key, 12)

    # deterministic synthetic parameters (already in x @ W layout)
    scale = 0.05
    wq = scale * jax.random.normal(ks[0], (E, E), jnp.float32)
    wk = scale * jax.random.normal(ks[1], (E, E), jnp.float32)
    wv = scale * jax.random.normal(ks[2], (E, E), jnp.float32)
    bq = scale * jax.random.normal(ks[3], (1, E), jnp.float32)
    bk = scale * jax.random.normal(ks[4], (1, E), jnp.float32)
    bv = scale * jax.random.normal(ks[5], (1, E), jnp.float32)
    wo = scale * jax.random.normal(ks[6], (E, E), jnp.float32)
    bo = scale * jax.random.normal(ks[7], (1, E), jnp.float32)
    g1 = jnp.ones((1, E), jnp.float32)
    be1 = jnp.zeros((1, E), jnp.float32)
    w1 = scale * jax.random.normal(ks[8], (E, HIDDEN), jnp.float32)
    b1 = scale * jax.random.normal(ks[9], (1, HIDDEN), jnp.float32)
    w2 = scale * jax.random.normal(ks[10], (HIDDEN, E), jnp.float32)
    b2 = scale * jax.random.normal(ks[11], (1, E), jnp.float32)
    g2 = jnp.ones((1, E), jnp.float32)
    be2 = jnp.zeros((1, E), jnp.float32)
    params = (wq, wk, wv, bq, bk, bv, wo, bo, g1, be1, w1, b1, w2, b2, g2, be2)

    query = jax.random.normal(jax.random.PRNGKey(42), (B, S, E), jnp.float32)
    # key_padding_mask: True = padded position (ignored as key)
    query_padding_mask = jnp.zeros((B, S), jnp.bool_).at[1, -2:].set(True)
    # additive float attn_mask: block attending to the last key for all queries
    # except the last one (keeps every softmax row with >=1 unmasked key)
    attn_mask = jnp.zeros((S, S), jnp.float32).at[:, -1].set(NEG_INF).at[-1, -1].set(0.0)

    out = self_interaction_block(query, query_padding_mask, attn_mask, params)
    out = jax.block_until_ready(out)

    ref = reference(query, query_padding_mask, attn_mask, params)
    # 1e-3 tolerance accounts for the ~12-bit accurate pl.reciprocal(approx=True)
    # used for the softmax denominator (exact math otherwise).
    np.testing.assert_allclose(np.asarray(out), np.asarray(ref), rtol=1e-3, atol=1e-3)

    print("KERNEL_OK")
</pallas_src>

<mosaic_0001>
module attributes {stable_mosaic.version = 11 : i64} {
  func.func @self_interaction_kernel(%arg0: memref<16x32xf32, #tpu.memory_space<vmem>>, %arg1: memref<2x8xf32, #tpu.memory_space<vmem>>, %arg2: memref<8x8xf32, #tpu.memory_space<vmem>>, %arg3: memref<32x96xf32, #tpu.memory_space<vmem>>, %arg4: memref<1x96xf32, #tpu.memory_space<vmem>>, %arg5: memref<32x32xf32, #tpu.memory_space<vmem>>, %arg6: memref<1x32xf32, #tpu.memory_space<vmem>>, %arg7: memref<1x32xf32, #tpu.memory_space<vmem>>, %arg8: memref<1x32xf32, #tpu.memory_space<vmem>>, %arg9: memref<32x64xf32, #tpu.memory_space<vmem>>, %arg10: memref<1x64xf32, #tpu.memory_space<vmem>>, %arg11: memref<64x32xf32, #tpu.memory_space<vmem>>, %arg12: memref<1x32xf32, #tpu.memory_space<vmem>>, %arg13: memref<1x32xf32, #tpu.memory_space<vmem>>, %arg14: memref<1x32xf32, #tpu.memory_space<vmem>>, %arg15: memref<16x32xf32, #tpu.memory_space<vmem>>, %arg16: memref<16x32xf32, #tpu.memory_space<vmem>>) attributes {dimension_semantics = [], scalar_prefetch = 0 : i64, scratch_operands = 1 : i64, tpu.core_type = #tpu.core_type<tc>} {
    %c0 = arith.constant 0 : index
    %c0_0 = arith.constant 0 : index
    %0 = vector.load %arg0[%c0, %c0_0] : memref<16x32xf32, #tpu.memory_space<vmem>>, vector<16x32xf32>
    %c0_1 = arith.constant 0 : index
    %c0_2 = arith.constant 0 : index
    %1 = vector.load %arg2[%c0_1, %c0_2] : memref<8x8xf32, #tpu.memory_space<vmem>>, vector<8x8xf32>
    %c0_3 = arith.constant 0 : index
    %c0_4 = arith.constant 0 : index
    %2 = vector.load %arg3[%c0_3, %c0_4] : memref<32x96xf32, #tpu.memory_space<vmem>>, vector<32x96xf32>
    %cst = arith.constant dense<0.000000e+00> : vector<16x96xf32>
    %3 = tpu.matmul %0, %2, %cst {dimension_numbers = #tpu.dot_dimension_numbers<[1], [0], [0], [1], [0, 0, 1, 1], [], []>} : vector<16x32xf32>, vector<32x96xf32>, vector<16x96xf32> -> vector<16x96xf32>
    %c0_5 = arith.constant 0 : index
    %c0_6 = arith.constant 0 : index
    %4 = vector.load %arg4[%c0_5, %c0_6] : memref<1x96xf32, #tpu.memory_space<vmem>>, vector<1x96xf32>
    %5 = vector.broadcast %4 : vector<1x96xf32> to vector<16x96xf32>
    %6 = arith.addf %3, %5 : vector<16x96xf32>
    %7 = vector.extract_strided_slice %6 {offsets = [0, 0], sizes = [16, 32], strides = [1, 1]} : vector<16x96xf32> to vector<16x32xf32>
    %cst_7 = arith.constant 0.353553385 : f32
    %8 = vector.broadcast %cst_7 : f32 to vector<16x32xf32>
    %9 = arith.mulf %7, %8 : vector<16x32xf32>
    %10 = vector.extract_strided_slice %6 {offsets = [0, 32], sizes = [16, 32], strides = [1, 1]} : vector<16x96xf32> to vector<16x32xf32>
    %11 = vector.extract_strided_slice %6 {offsets = [0, 64], sizes = [16, 32], strides = [1, 1]} : vector<16x96xf32> to vector<16x32xf32>
    %12 = vector.extract_strided_slice %9 {offsets = [0, 0], sizes = [8, 32], strides = [1, 1]} : vector<16x32xf32> to vector<8x32xf32>
    %13 = vector.extract_strided_slice %10 {offsets = [0, 0], sizes = [8, 32], strides = [1, 1]} : vector<16x32xf32> to vector<8x32xf32>
    %14 = vector.extract_strided_slice %11 {offsets = [0, 0], sizes = [8, 32], strides = [1, 1]} : vector<16x32xf32> to vector<8x32xf32>
    %c0_8 = arith.constant 0 : index
    %c0_9 = arith.constant 0 : index
    %15 = vector.load %arg1[%c0_8, %c0_9] : memref<2x8xf32, #tpu.memory_space<vmem>>, vector<1x8xf32>
    %16 = vector.broadcast %15 : vector<1x8xf32> to vector<8x8xf32>
    %17 = arith.addf %1, %16 : vector<8x8xf32>
    %18 = vector.extract_strided_slice %12 {offsets = [0, 0], sizes = [8, 8], strides = [1, 1]} : vector<8x32xf32> to vector<8x8xf32>
    %19 = vector.extract_strided_slice %13 {offsets = [0, 0], sizes = [8, 8], strides = [1, 1]} : vector<8x32xf32> to vector<8x8xf32>
    %20 = vector.extract_strided_slice %14 {offsets = [0, 0], sizes = [8, 8], strides = [1, 1]} : vector<8x32xf32> to vector<8x8xf32>
    %cst_10 = arith.constant dense<0.000000e+00> : vector<8x8xf32>
    %21 = tpu.matmul %18, %19, %cst_10 {dimension_numbers = #tpu.dot_dimension_numbers<[1], [1], [0], [0], [0, 0, 1, 0], [], []>} : vector<8x8xf32>, vector<8x8xf32>, vector<8x8xf32> -> vector<8x8xf32>
    %22 = arith.addf %21, %17 : vector<8x8xf32>
    %cst_11 = arith.constant dense<0xFF800000> : vector<8xf32>
    %23 = vector.multi_reduction <maximumf>, %22, %cst_11 [1] : vector<8x8xf32> to vector<8xf32>
    %24 = vector.shape_cast %23 : vector<8xf32> to vector<8x1xf32>
    %25 = vector.broadcast %24 : vector<8x1xf32> to vector<8x8xf32>
    %26 = arith.subf %22, %25 : vector<8x8xf32>
    %27 = math.exp %26 : vector<8x8xf32>
    %cst_12 = arith.constant dense<0.000000e+00> : vector<8xf32>
    %28 = vector.multi_reduction <add>, %27, %cst_12 [1] : vector<8x8xf32> to vector<8xf32>
    %29 = vector.shape_cast %28 : vector<8xf32> to vector<8x1xf32>
    %30 = tpu.reciprocal %29 {approx = true} : vector<8x1xf32> -> vector<8x1xf32>
    %31 = vector.broadcast %30 : vector<8x1xf32> to vector<8x8xf32>
    %32 = arith.mulf %27, %31 : vector<8x8xf32>
    %cst_13 = arith.constant dense<0.000000e+00> : vector<8x8xf32>
    %33 = tpu.matmul %32, %20, %cst_13 {dimension_numbers = #tpu.dot_dimension_numbers<[1], [0], [0], [1], [0, 0, 1, 1], [], []>} : vector<8x8xf32>, vector<8x8xf32>, vector<8x8xf32> -> vector<8x8xf32>
    %c0_14 = arith.constant 0 : index
    %c0_15 = arith.constant 0 : index
    %34 = vector.load %arg16[%c0_14, %c0_15] : memref<16x32xf32, #tpu.memory_space<vmem>>, vector<8x8xf32>
    tpu.vector_store %arg16[%c0_14, %c0_15], %33 {strides = array<i32>} : memref<16x32xf32, #tpu.memory_space<vmem>>, vector<8x8xf32>,
    %35 = vector.extract_strided_slice %12 {offsets = [0, 8], sizes = [8, 8], strides = [1, 1]} : vector<8x32xf32> to vector<8x8xf32>
    %36 = vector.extract_strided_slice %13 {offsets = [0, 8], sizes = [8, 8], strides = [1, 1]} : vector<8x32xf32> to vector<8x8xf32>
    %37 = vector.extract_strided_slice %14 {offsets = [0, 8], sizes = [8, 8], strides = [1, 1]} : vector<8x32xf32> to vector<8x8xf32>
    %cst_16 = arith.constant dense<0.000000e+00> : vector<8x8xf32>
    %38 = tpu.matmul %35, %36, %cst_16 {dimension_numbers = #tpu.dot_dimension_numbers<[1], [1], [0], [0], [0, 0, 1, 0], [], []>} : vector<8x8xf32>, vector<8x8xf32>, vector<8x8xf32> -> vector<8x8xf32>
    %39 = arith.addf %38, %17 : vector<8x8xf32>
    %cst_17 = arith.constant dense<0xFF800000> : vector<8xf32>
    %40 = vector.multi_reduction <maximumf>, %39, %cst_17 [1] : vector<8x8xf32> to vector<8xf32>
    %41 = vector.shape_cast %40 : vector<8xf32> to vector<8x1xf32>
    %42 = vector.broadcast %41 : vector<8x1xf32> to vector<8x8xf32>
    %43 = arith.subf %39, %42 : vector<8x8xf32>
    %44 = math.exp %43 : vector<8x8xf32>
    %cst_18 = arith.constant dense<0.000000e+00> : vector<8xf32>
    %45 = vector.multi_reduction <add>, %44, %cst_18 [1] : vector<8x8xf32> to vector<8xf32>
    %46 = vector.shape_cast %45 : vector<8xf32> to vector<8x1xf32>
    %47 = tpu.reciprocal %46 {approx = true} : vector<8x1xf32> -> vector<8x1xf32>
    %48 = vector.broadcast %47 : vector<8x1xf32> to vector<8x8xf32>
    %49 = arith.mulf %44, %48 : vector<8x8xf32>
    %cst_19 = arith.constant dense<0.000000e+00> : vector<8x8xf32>
    %50 = tpu.matmul %49, %37, %cst_19 {dimension_numbers = #tpu.dot_dimension_numbers<[1], [0], [0], [1], [0, 0, 1, 1], [], []>} : vector<8x8xf32>, vector<8x8xf32>, vector<8x8xf32> -> vector<8x8xf32>
    %c0_20 = arith.constant 0 : index
    %c8 = arith.constant 8 : index
    %51 = vector.load %arg16[%c0_20, %c8] : memref<16x32xf32, #tpu.memory_space<vmem>>, vector<8x8xf32>
    tpu.vector_store %arg16[%c0_20, %c8], %50 {strides = array<i32>} : memref<16x32xf32, #tpu.memory_space<vmem>>, vector<8x8xf32>,
    %52 = vector.extract_strided_slice %12 {offsets = [0, 16], sizes = [8, 8], strides = [1, 1]} : vector<8x32xf32> to vector<8x8xf32>
    %53 = vector.extract_strided_slice %13 {offsets = [0, 16], sizes = [8, 8], strides = [1, 1]} : vector<8x32xf32> to vector<8x8xf32>
    %54 = vector.extract_strided_slice %14 {offsets = [0, 16], sizes = [8, 8], strides = [1, 1]} : vector<8x32xf32> to vector<8x8xf32>
    %cst_21 = arith.constant dense<0.000000e+00> : vector<8x8xf32>
    %55 = tpu.matmul %52, %53, %cst_21 {dimension_numbers = #tpu.dot_dimension_numbers<[1], [1], [0], [0], [0, 0, 1, 0], [], []>} : vector<8x8xf32>, vector<8x8xf32>, vector<8x8xf32> -> vector<8x8xf32>
    %56 = arith.addf %55, %17 : vector<8x8xf32>
    %cst_22 = arith.constant dense<0xFF800000> : vector<8xf32>
    %57 = vector.multi_reduction <maximumf>, %56, %cst_22 [1] : vector<8x8xf32> to vector<8xf32>
    %58 = vector.shape_cast %57 : vector<8xf32> to vector<8x1xf32>
    %59 = vector.broadcast %58 : vector<8x1xf32> to vector<8x8xf32>
    %60 = arith.subf %56, %59 : vector<8x8xf32>
    %61 = math.exp %60 : vector<8x8xf32>
    %cst_23 = arith.constant dense<0.000000e+00> : vector<8xf32>
    %62 = vector.multi_reduction <add>, %61, %cst_23 [1] : vector<8x8xf32> to vector<8xf32>
    %63 = vector.shape_cast %62 : vector<8xf32> to vector<8x1xf32>
    %64 = tpu.reciprocal %63 {approx = true} : vector<8x1xf32> -> vector<8x1xf32>
    %65 = vector.broadcast %64 : vector<8x1xf32> to vector<8x8xf32>
    %66 = arith.mulf %61, %65 : vector<8x8xf32>
    %cst_24 = arith.constant dense<0.000000e+00> : vector<8x8xf32>
    %67 = tpu.matmul %66, %54, %cst_24 {dimension_numbers = #tpu.dot_dimension_numbers<[1], [0], [0], [1], [0, 0, 1, 1], [], []>} : vector<8x8xf32>, vector<8x8xf32>, vector<8x8xf32> -> vector<8x8xf32>
    %c0_25 = arith.constant 0 : index
    %c16 = arith.constant 16 : index
    %68 = vector.load %arg16[%c0_25, %c16] : memref<16x32xf32, #tpu.memory_space<vmem>>, vector<8x8xf32>
    tpu.vector_store %arg16[%c0_25, %c16], %67 {strides = array<i32>} : memref<16x32xf32, #tpu.memory_space<vmem>>, vector<8x8xf32>,
    %69 = vector.extract_strided_slice %12 {offsets = [0, 24], sizes = [8, 8], strides = [1, 1]} : vector<8x32xf32> to vector<8x8xf32>
    %70 = vector.extract_strided_slice %13 {offsets = [0, 24], sizes = [8, 8], strides = [1, 1]} : vector<8x32xf32> to vector<8x8xf32>
    %71 = vector.extract_strided_slice %14 {offsets = [0, 24], sizes = [8, 8], strides = [1, 1]} : vector<8x32xf32> to vector<8x8xf32>
    %cst_26 = arith.constant dense<0.000000e+00> : vector<8x8xf32>
    %72 = tpu.matmul %69, %70, %cst_26 {dimension_numbers = #tpu.dot_dimension_numbers<[1], [1], [0], [0], [0, 0, 1, 0], [], []>} : vector<8x8xf32>, vector<8x8xf32>, vector<8x8xf32> -> vector<8x8xf32>
    %73 = arith.addf %72, %17 : vector<8x8xf32>
    %cst_27 = arith.constant dense<0xFF800000> : vector<8xf32>
    %74 = vector.multi_reduction <maximumf>, %73, %cst_27 [1] : vector<8x8xf32> to vector<8xf32>
    %75 = vector.shape_cast %74 : vector<8xf32> to vector<8x1xf32>
    %76 = vector.broadcast %75 : vector<8x1xf32> to vector<8x8xf32>
    %77 = arith.subf %73, %76 : vector<8x8xf32>
    %78 = math.exp %77 : vector<8x8xf32>
    %cst_28 = arith.constant dense<0.000000e+00> : vector<8xf32>
    %79 = vector.multi_reduction <add>, %78, %cst_28 [1] : vector<8x8xf32> to vector<8xf32>
    %80 = vector.shape_cast %79 : vector<8xf32> to vector<8x1xf32>
    %81 = tpu.reciprocal %80 {approx = true} : vector<8x1xf32> -> vector<8x1xf32>
    %82 = vector.broadcast %81 : vector<8x1xf32> to vector<8x8xf32>
    %83 = arith.mulf %78, %82 : vector<8x8xf32>
    %cst_29 = arith.constant dense<0.000000e+00> : vector<8x8xf32>
    %84 = tpu.matmul %83, %71, %cst_29 {dimension_numbers = #tpu.dot_dimension_numbers<[1], [0], [0], [1], [0, 0, 1, 1], [], []>} : vector<8x8xf32>, vector<8x8xf32>, vector<8x8xf32> -> vector<8x8xf32>
    %c0_30 = arith.constant 0 : index
    %c24 = arith.constant 24 : index
    %85 = vector.load %arg16[%c0_30, %c24] : memref<16x32xf32, #tpu.memory_space<vmem>>, vector<8x8xf32>
    tpu.vector_store %arg16[%c0_30, %c24], %84 {strides = array<i32>} : memref<16x32xf32, #tpu.memory_space<vmem>>, vector<8x8xf32>,
    %86 = vector.extract_strided_slice %9 {offsets = [8, 0], sizes = [8, 32], strides = [1, 1]} : vector<16x32xf32> to vector<8x32xf32>
    %87 = vector.extract_strided_slice %10 {offsets = [8, 0], sizes = [8, 32], strides = [1, 1]} : vector<16x32xf32> to vector<8x32xf32>
    %88 = vector.extract_strided_slice %11 {offsets = [8, 0], sizes = [8, 32], strides = [1, 1]} : vector<16x32xf32> to vector<8x32xf32>
    %c1 = arith.constant 1 : index
    %c0_31 = arith.constant 0 : index
    %89 = vector.load %arg1[%c1, %c0_31] : memref<2x8xf32, #tpu.memory_space<vmem>>, vector<1x8xf32>
    %90 = vector.broadcast %89 : vector<1x8xf32> to vector<8x8xf32>
    %91 = arith.addf %1, %90 : vector<8x8xf32>
    %92 = vector.extract_strided_slice %86 {offsets = [0, 0], sizes = [8, 8], strides = [1, 1]} : vector<8x32xf32> to vector<8x8xf32>
    %93 = vector.extract_strided_slice %87 {offsets = [0, 0], sizes = [8, 8], strides = [1, 1]} : vector<8x32xf32> to vector<8x8xf32>
    %94 = vector.extract_strided_slice %88 {offsets = [0, 0], sizes = [8, 8], strides = [1, 1]} : vector<8x32xf32> to vector<8x8xf32>
    %cst_32 = arith.constant dense<0.000000e+00> : vector<8x8xf32>
    %95 = tpu.matmul %92, %93, %cst_32 {dimension_numbers = #tpu.dot_dimension_numbers<[1], [1], [0], [0], [0, 0, 1, 0], [], []>} : vector<8x8xf32>, vector<8x8xf32>, vector<8x8xf32> -> vector<8x8xf32>
    %96 = arith.addf %95, %91 : vector<8x8xf32>
    %cst_33 = arith.constant dense<0xFF800000> : vector<8xf32>
    %97 = vector.multi_reduction <maximumf>, %96, %cst_33 [1] : vector<8x8xf32> to vector<8xf32>
    %98 = vector.shape_cast %97 : vector<8xf32> to vector<8x1xf32>
    %99 = vector.broadcast %98 : vector<8x1xf32> to vector<8x8xf32>
    %100 = arith.subf %96, %99 : vector<8x8xf32>
    %101 = math.exp %100 : vector<8x8xf32>
    %cst_34 = arith.constant dense<0.000000e+00> : vector<8xf32>
    %102 = vector.multi_reduction <add>, %101, %cst_34 [1] : vector<8x8xf32> to vector<8xf32>
    %103 = vector.shape_cast %102 : vector<8xf32> to vector<8x1xf32>
    %104 = tpu.reciprocal %103 {approx = true} : vector<8x1xf32> -> vector<8x1xf32>
    %105 = vector.broadcast %104 : vector<8x1xf32> to vector<8x8xf32>
    %106 = arith.mulf %101, %105 : vector<8x8xf32>
    %cst_35 = arith.constant dense<0.000000e+00> : vector<8x8xf32>
    %107 = tpu.matmul %106, %94, %cst_35 {dimension_numbers = #tpu.dot_dimension_numbers<[1], [0], [0], [1], [0, 0, 1, 1], [], []>} : vector<8x8xf32>, vector<8x8xf32>, vector<8x8xf32> -> vector<8x8xf32>
    %c8_36 = arith.constant 8 : index
    %c0_37 = arith.constant 0 : index
    %108 = vector.load %arg16[%c8_36, %c0_37] : memref<16x32xf32, #tpu.memory_space<vmem>>, vector<8x8xf32>
    tpu.vector_store %arg16[%c8_36, %c0_37], %107 {strides = array<i32>} : memref<16x32xf32, #tpu.memory_space<vmem>>, vector<8x8xf32>,
    %109 = vector.extract_strided_slice %86 {offsets = [0, 8], sizes = [8, 8], strides = [1, 1]} : vector<8x32xf32> to vector<8x8xf32>
    %110 = vector.extract_strided_slice %87 {offsets = [0, 8], sizes = [8, 8], strides = [1, 1]} : vector<8x32xf32> to vector<8x8xf32>
    %111 = vector.extract_strided_slice %88 {offsets = [0, 8], sizes = [8, 8], strides = [1, 1]} : vector<8x32xf32> to vector<8x8xf32>
    %cst_38 = arith.constant dense<0.000000e+00> : vector<8x8xf32>
    %112 = tpu.matmul %109, %110, %cst_38 {dimension_numbers = #tpu.dot_dimension_numbers<[1], [1], [0], [0], [0, 0, 1, 0], [], []>} : vector<8x8xf32>, vector<8x8xf32>, vector<8x8xf32> -> vector<8x8xf32>
    %113 = arith.addf %112, %91 : vector<8x8xf32>
    %cst_39 = arith.constant dense<0xFF800000> : vector<8xf32>
    %114 = vector.multi_reduction <maximumf>, %113, %cst_39 [1] : vector<8x8xf32> to vector<8xf32>
    %115 = vector.shape_cast %114 : vector<8xf32> to vector<8x1xf32>
    %116 = vector.broadcast %115 : vector<8x1xf32> to vector<8x8xf32>
    %117 = arith.subf %113, %116 : vector<8x8xf32>
    %118 = math.exp %117 : vector<8x8xf32>
    %cst_40 = arith.constant dense<0.000000e+00> : vector<8xf32>
    %119 = vector.multi_reduction <add>, %118, %cst_40 [1] : vector<8x8xf32> to vector<8xf32>
    %120 = vector.shape_cast %119 : vector<8xf32> to vector<8x1xf32>
    %121 = tpu.reciprocal %120 {approx = true} : vector<8x1xf32> -> vector<8x1xf32>
    %122 = vector.broadcast %121 : vector<8x1xf32> to vector<8x8xf32>
    %123 = arith.mulf %118, %122 : vector<8x8xf32>
    %cst_41 = arith.constant dense<0.000000e+00> : vector<8x8xf32>
    %124 = tpu.matmul %123, %111, %cst_41 {dimension_numbers = #tpu.dot_dimension_numbers<[1], [0], [0], [1], [0, 0, 1, 1], [], []>} : vector<8x8xf32>, vector<8x8xf32>, vector<8x8xf32> -> vector<8x8xf32>
    %c8_42 = arith.constant 8 : index
    %c8_43 = arith.constant 8 : index
    %125 = vector.load %arg16[%c8_42, %c8_43] : memref<16x32xf32, #tpu.memory_space<vmem>>, vector<8x8xf32>
    tpu.vector_store %arg16[%c8_42, %c8_43], %124 {strides = array<i32>} : memref<16x32xf32, #tpu.memory_space<vmem>>, vector<8x8xf32>,
    %126 = vector.extract_strided_slice %86 {offsets = [0, 16], sizes = [8, 8], strides = [1, 1]} : vector<8x32xf32> to vector<8x8xf32>
    %127 = vector.extract_strided_slice %87 {offsets = [0, 16], sizes = [8, 8], strides = [1, 1]} : vector<8x32xf32> to vector<8x8xf32>
    %128 = vector.extract_strided_slice %88 {offsets = [0, 16], sizes = [8, 8], strides = [1, 1]} : vector<8x32xf32> to vector<8x8xf32>
    %cst_44 = arith.constant dense<0.000000e+00> : vector<8x8xf32>
    %129 = tpu.matmul %126, %127, %cst_44 {dimension_numbers = #tpu.dot_dimension_numbers<[1], [1], [0], [0], [0, 0, 1, 0], [], []>} : vector<8x8xf32>, vector<8x8xf32>, vector<8x8xf32> -> vector<8x8xf32>
    %130 = arith.addf %129, %91 : vector<8x8xf32>
    %cst_45 = arith.constant dense<0xFF800000> : vector<8xf32>
    %131 = vector.multi_reduction <maximumf>, %130, %cst_45 [1] : vector<8x8xf32> to vector<8xf32>
    %132 = vector.shape_cast %131 : vector<8xf32> to vector<8x1xf32>
    %133 = vector.broadcast %132 : vector<8x1xf32> to vector<8x8xf32>
    %134 = arith.subf %130, %133 : vector<8x8xf32>
    %135 = math.exp %134 : vector<8x8xf32>
    %cst_46 = arith.constant dense<0.000000e+00> : vector<8xf32>
    %136 = vector.multi_reduction <add>, %135, %cst_46 [1] : vector<8x8xf32> to vector<8xf32>
    %137 = vector.shape_cast %136 : vector<8xf32> to vector<8x1xf32>
    %138 = tpu.reciprocal %137 {approx = true} : vector<8x1xf32> -> vector<8x1xf32>
    %139 = vector.broadcast %138 : vector<8x1xf32> to vector<8x8xf32>
    %140 = arith.mulf %135, %139 : vector<8x8xf32>
    %cst_47 = arith.constant dense<0.000000e+00> : vector<8x8xf32>
    %141 = tpu.matmul %140, %128, %cst_47 {dimension_numbers = #tpu.dot_dimension_numbers<[1], [0], [0], [1], [0, 0, 1, 1], [], []>} : vector<8x8xf32>, vector<8x8xf32>, vector<8x8xf32> -> vector<8x8xf32>
    %c8_48 = arith.constant 8 : index
    %c16_49 = arith.constant 16 : index
    %142 = vector.load %arg16[%c8_48, %c16_49] : memref<16x32xf32, #tpu.memory_space<vmem>>, vector<8x8xf32>
    tpu.vector_store %arg16[%c8_48, %c16_49], %141 {strides = array<i32>} : memref<16x32xf32, #tpu.memory_space<vmem>>, vector<8x8xf32>,
    %143 = vector.extract_strided_slice %86 {offsets = [0, 24], sizes = [8, 8], strides = [1, 1]} : vector<8x32xf32> to vector<8x8xf32>
    %144 = vector.extract_strided_slice %87 {offsets = [0, 24], sizes = [8, 8], strides = [1, 1]} : vector<8x32xf32> to vector<8x8xf32>
    %145 = vector.extract_strided_slice %88 {offsets = [0, 24], sizes = [8, 8], strides = [1, 1]} : vector<8x32xf32> to vector<8x8xf32>
    %cst_50 = arith.constant dense<0.000000e+00> : vector<8x8xf32>
    %146 = tpu.matmul %143, %144, %cst_50 {dimension_numbers = #tpu.dot_dimension_numbers<[1], [1], [0], [0], [0, 0, 1, 0], [], []>} : vector<8x8xf32>, vector<8x8xf32>, vector<8x8xf32> -> vector<8x8xf32>
    %147 = arith.addf %146, %91 : vector<8x8xf32>
    %cst_51 = arith.constant dense<0xFF800000> : vector<8xf32>
    %148 = vector.multi_reduction <maximumf>, %147, %cst_51 [1] : vector<8x8xf32> to vector<8xf32>
    %149 = vector.shape_cast %148 : vector<8xf32> to vector<8x1xf32>
    %150 = vector.broadcast %149 : vector<8x1xf32> to vector<8x8xf32>
    %151 = arith.subf %147, %150 : vector<8x8xf32>
    %152 = math.exp %151 : vector<8x8xf32>
    %cst_52 = arith.constant dense<0.000000e+00> : vector<8xf32>
    %153 = vector.multi_reduction <add>, %152, %cst_52 [1] : vector<8x8xf32> to vector<8xf32>
    %154 = vector.shape_cast %153 : vector<8xf32> to vector<8x1xf32>
    %155 = tpu.reciprocal %154 {approx = true} : vector<8x1xf32> -> vector<8x1xf32>
    %156 = vector.broadcast %155 : vector<8x1xf32> to vector<8x8xf32>
    %157 = arith.mulf %152, %156 : vector<8x8xf32>
    %cst_53 = arith.constant dense<0.000000e+00> : vector<8x8xf32>
    %158 = tpu.matmul %157, %145, %cst_53 {dimension_numbers = #tpu.dot_dimension_numbers<[1], [0], [0], [1], [0, 0, 1, 1], [], []>} : vector<8x8xf32>, vector<8x8xf32>, vector<8x8xf32> -> vector<8x8xf32>
    %c8_54 = arith.constant 8 : index
    %c24_55 = arith.constant 24 : index
    %159 = vector.load %arg16[%c8_54, %c24_55] : memref<16x32xf32, #tpu.memory_space<vmem>>, vector<8x8xf32>
    tpu.vector_store %arg16[%c8_54, %c24_55], %158 {strides = array<i32>} : memref<16x32xf32, #tpu.memory_space<vmem>>, vector<8x8xf32>,
    %c0_56 = arith.constant 0 : index
    %c0_57 = arith.constant 0 : index
    %160 = vector.load %arg16[%c0_56, %c0_57] : memref<16x32xf32, #tpu.memory_space<vmem>>, vector<16x32xf32>
    %c0_58 = arith.constant 0 : index
    %c0_59 = arith.constant 0 : index
    %161 = vector.load %arg5[%c0_58, %c0_59] : memref<32x32xf32, #tpu.memory_space<vmem>>, vector<32x32xf32>
    %cst_60 = arith.constant dense<0.000000e+00> : vector<16x32xf32>
    %162 = tpu.matmul %160, %161, %cst_60 {dimension_numbers = #tpu.dot_dimension_numbers<[1], [0], [0], [1], [0, 0, 1, 1], [], []>} : vector<16x32xf32>, vector<32x32xf32>, vector<16x32xf32> -> vector<16x32xf32>
    %c0_61 = arith.constant 0 : index
    %c0_62 = arith.constant 0 : index
    %163 = vector.load %arg6[%c0_61, %c0_62] : memref<1x32xf32, #tpu.memory_space<vmem>>, vector<1x32xf32>
    %164 = vector.broadcast %163 : vector<1x32xf32> to vector<16x32xf32>
    %165 = arith.addf %162, %164 : vector<16x32xf32>
    %166 = arith.addf %0, %165 : vector<16x32xf32>
    %c0_63 = arith.constant 0 : index
    %c0_64 = arith.constant 0 : index
    %167 = vector.load %arg7[%c0_63, %c0_64] : memref<1x32xf32, #tpu.memory_space<vmem>>, vector<1x32xf32>
    %c0_65 = arith.constant 0 : index
    %c0_66 = arith.constant 0 : index
    %168 = vector.load %arg8[%c0_65, %c0_66] : memref<1x32xf32, #tpu.memory_space<vmem>>, vector<1x32xf32>
    %cst_67 = arith.constant dense<0.000000e+00> : vector<16xf32>
    %169 = vector.multi_reduction <add>, %166, %cst_67 [1] : vector<16x32xf32> to vector<16xf32>
    %170 = vector.shape_cast %169 : vector<16xf32> to vector<16x1xf32>
    %cst_68 = arith.constant 3.200000e+01 : f32
    %171 = vector.broadcast %cst_68 : f32 to vector<16x1xf32>
    %172 = arith.divf %170, %171 : vector<16x1xf32>
    %173 = vector.broadcast %172 : vector<16x1xf32> to vector<16x32xf32>
    %174 = arith.subf %166, %173 : vector<16x32xf32>
    %175 = arith.mulf %174, %174 : vector<16x32xf32>
    %cst_69 = arith.constant dense<0.000000e+00> : vector<16xf32>
    %176 = vector.multi_reduction <add>, %175, %cst_69 [1] : vector<16x32xf32> to vector<16xf32>
    %177 = vector.shape_cast %176 : vector<16xf32> to vector<16x1xf32>
    %cst_70 = arith.constant 3.200000e+01 : f32
    %178 = vector.broadcast %cst_70 : f32 to vector<16x1xf32>
    %179 = arith.divf %177, %178 : vector<16x1xf32>
    %180 = vector.broadcast %172 : vector<16x1xf32> to vector<16x32xf32>
    %181 = arith.subf %166, %180 : vector<16x32xf32>
    %cst_71 = arith.constant 9.99999974E-6 : f32
    %182 = vector.broadcast %cst_71 : f32 to vector<16x1xf32>
    %183 = arith.addf %179, %182 : vector<16x1xf32>
    %184 = math.rsqrt %183 : vector<16x1xf32>
    %185 = vector.broadcast %184 : vector<16x1xf32> to vector<16x32xf32>
    %186 = arith.mulf %181, %185 : vector<16x32xf32>
    %187 = vector.broadcast %167 : vector<1x32xf32> to vector<16x32xf32>
    %188 = arith.mulf %186, %187 : vector<16x32xf32>
    %189 = vector.broadcast %168 : vector<1x32xf32> to vector<16x32xf32>
    %190 = arith.addf %188, %189 : vector<16x32xf32>
    %c0_72 = arith.constant 0 : index
    %c0_73 = arith.constant 0 : index
    %191 = vector.load %arg9[%c0_72, %c0_73] : memref<32x64xf32, #tpu.memory_space<vmem>>, vector<32x64xf32>
    %cst_74 = arith.constant dense<0.000000e+00> : vector<16x64xf32>
    %192 = tpu.matmul %190, %191, %cst_74 {dimension_numbers = #tpu.dot_dimension_numbers<[1], [0], [0], [1], [0, 0, 1, 1], [], []>} : vector<16x32xf32>, vector<32x64xf32>, vector<16x64xf32> -> vector<16x64xf32>
    %c0_75 = arith.constant 0 : index
    %c0_76 = arith.constant 0 : index
    %193 = vector.load %arg10[%c0_75, %c0_76] : memref<1x64xf32, #tpu.memory_space<vmem>>, vector<1x64xf32>
    %194 = vector.broadcast %193 : vector<1x64xf32> to vector<16x64xf32>
    %195 = arith.addf %192, %194 : vector<16x64xf32>
    %cst_77 = arith.constant 0.000000e+00 : f32
    %196 = vector.broadcast %cst_77 : f32 to vector<16x64xf32>
    %197 = arith.maximumf %195, %196 : vector<16x64xf32>
    %c0_78 = arith.constant 0 : index
    %c0_79 = arith.constant 0 : index
    %198 = vector.load %arg11[%c0_78, %c0_79] : memref<64x32xf32, #tpu.memory_space<vmem>>, vector<64x32xf32>
    %cst_80 = arith.constant dense<0.000000e+00> : vector<16x32xf32>
    %199 = tpu.matmul %197, %198, %cst_80 {dimension_numbers = #tpu.dot_dimension_numbers<[1], [0], [0], [1], [0, 0, 1, 1], [], []>} : vector<16x64xf32>, vector<64x32xf32>, vector<16x32xf32> -> vector<16x32xf32>
    %c0_81 = arith.constant 0 : index
    %c0_82 = arith.constant 0 : index
    %200 = vector.load %arg12[%c0_81, %c0_82] : memref<1x32xf32, #tpu.memory_space<vmem>>, vector<1x32xf32>
    %201 = vector.broadcast %200 : vector<1x32xf32> to vector<16x32xf32>
    %202 = arith.addf %199, %201 : vector<16x32xf32>
    %203 = arith.addf %190, %202 : vector<16x32xf32>
    %c0_83 = arith.constant 0 : index
    %c0_84 = arith.constant 0 : index
    %204 = vector.load %arg13[%c0_83, %c0_84] : memref<1x32xf32, #tpu.memory_space<vmem>>, vector<1x32xf32>
    %c0_85 = arith.constant 0 : index
    %c0_86 = arith.constant 0 : index
    %205 = vector.load %arg14[%c0_85, %c0_86] : memref<1x32xf32, #tpu.memory_space<vmem>>, vector<1x32xf32>
    %cst_87 = arith.constant dense<0.000000e+00> : vector<16xf32>
    %206 = vector.multi_reduction <add>, %203, %cst_87 [1] : vector<16x32xf32> to vector<16xf32>
    %207 = vector.shape_cast %206 : vector<16xf32> to vector<16x1xf32>
    %cst_88 = arith.constant 3.200000e+01 : f32
    %208 = vector.broadcast %cst_88 : f32 to vector<16x1xf32>
    %209 = arith.divf %207, %208 : vector<16x1xf32>
    %210 = vector.broadcast %209 : vector<16x1xf32> to vector<16x32xf32>
    %211 = arith.subf %203, %210 : vector<16x32xf32>
    %212 = arith.mulf %211, %211 : vector<16x32xf32>
    %cst_89 = arith.constant dense<0.000000e+00> : vector<16xf32>
    %213 = vector.multi_reduction <add>, %212, %cst_89 [1] : vector<16x32xf32> to vector<16xf32>
    %214 = vector.shape_cast %213 : vector<16xf32> to vector<16x1xf32>
    %cst_90 = arith.constant 3.200000e+01 : f32
    %215 = vector.broadcast %cst_90 : f32 to vector<16x1xf32>
    %216 = arith.divf %214, %215 : vector<16x1xf32>
    %217 = vector.broadcast %209 : vector<16x1xf32> to vector<16x32xf32>
    %218 = arith.subf %203, %217 : vector<16x32xf32>
    %cst_91 = arith.constant 9.99999974E-6 : f32
    %219 = vector.broadcast %cst_91 : f32 to vector<16x1xf32>
    %220 = arith.addf %216, %219 : vector<16x1xf32>
    %221 = math.rsqrt %220 : vector<16x1xf32>
    %222 = vector.broadcast %221 : vector<16x1xf32> to vector<16x32xf32>
    %223 = arith.mulf %218, %222 : vector<16x32xf32>
    %224 = vector.broadcast %204 : vector<1x32xf32> to vector<16x32xf32>
    %225 = arith.mulf %223, %224 : vector<16x32xf32>
    %226 = vector.broadcast %205 : vector<1x32xf32> to vector<16x32xf32>
    %227 = arith.addf %225, %226 : vector<16x32xf32>
    %c0_92 = arith.constant 0 : index
    %c0_93 = arith.constant 0 : index
    %228 = vector.load %arg15[%c0_92, %c0_93] : memref<16x32xf32, #tpu.memory_space<vmem>>, vector<16x32xf32>
    tpu.vector_store %arg15[%c0_92, %c0_93], %227 {strides = array<i32>} : memref<16x32xf32, #tpu.memory_space<vmem>>, vector<16x32xf32>,
    return
  }
}

</mosaic_0001>

<bundles_post_ra>
// kernel: tpu_custom_call.1
= control target key start
LH: loop header
LB: loop body
LE: loop exit
PB: predicated region body
PF: predicated region fallthrough
CT: control target
= control target key end

     0   :  { %20 = vsyncpa [#allocation4], 0  ;;  %s2744_s0 = inlined_call_operand.hbm [shape: f32[16,32], index: 0, kind: input, shape index: {}]   ;;  %s2745_s1 = inlined_call_operand.vmem [shape: f32[2,8], index: 1, kind: input, shape index: {}]   ;;  %s2746_s2 = inlined_call_operand.hbm [shape: f32[8,8], index: 2, kind: input, shape index: {}]   ;;  %s2747_s3 = inlined_call_operand.vmem [shape: f32[32,96], index: 3, kind: input, shape index: {}]   ;;  %s2748_s4 = inlined_call_operand.vmem [shape: f32[1,96], index: 4, kind: input, shape index: {}]   ;;  %s2749_s5 = inlined_call_operand.vmem [shape: f32[32,32], index: 5, kind: input, shape index: {}]   ;;  %s2750_s6 = inlined_call_operand.vmem [shape: f32[1,32], index: 6, kind: input, shape index: {}]   ;;  %s2751_s7 = inlined_call_operand.vmem [shape: f32[1,32], index: 7, kind: input, shape index: {}]   ;;  %s2752_s8 = inlined_call_operand.vmem [shape: f32[1,32], index: 8, kind: input, shape index: {}]   ;;  %s2753_s9 = inlined_call_operand.vmem [shape: f32[32,64], index: 9, kind: input, shape index: {}]   ;;  %s2754_s10 = inlined_call_operand.vmem [shape: f32[1,64], index: 10, kind: input, shape index: {}]   ;;  %s2755_s11 = inlined_call_operand.vmem [shape: f32[64,32], index: 11, kind: input, shape index: {}]   ;;  %s2756_s12 = inlined_call_operand.vmem [shape: f32[1,32], index: 12, kind: input, shape index: {}]   ;;  %s2757_s13 = inlined_call_operand.vmem [shape: f32[1,32], index: 13, kind: input, shape index: {}]   ;;  %s2758_s14 = inlined_call_operand.vmem [shape: f32[1,32], index: 14, kind: input, shape index: {}]   ;;  %s2759_s15 = inlined_call_operand.hbm [shape: f32[16,32], index: 15, kind: output, shape index: {}]  }
   0x1   :  { %21 = vsyncpa [#allocation7], 0 }
   0x2   :  { %22 = vsyncpa [#allocation5], 0  ;;  %s2347_s18 = smov [#allocation3]   ;;  %s2275_s22 = scalar_lea.hbm %s2744_s0, 256 }
   0x3   :  { %s28_s19 = sshll.u32 %s2347_s18, 4  ;;  %p2276_p0 = scmp.ne.s32.totalorder %s2744_s0, %s2275_s22  ;;  %s29_s19 = int_to_ptr.vmem [resolvable:$true] %s28_s19 }
   0x4   :  { %p2279_p1 = scmp.lt.u32.totalorder %s2275_s22, %s2744_s0 }
   0x6   :  { %p2281_p2 = pnand %p2279_p1, %p2276_p0 }
   0x8   :  { %2284 = shalt.err (!%p2281_p2)
}
   0x9   :  { %s2285_s27 = scalar_lea.vmem %s29_s19, 256  ;;  %p2290_p4 = scmp.lt.s32.totalorder %s29_s19, %s29_s19 }
   0xa   :  { %p2286_p3 = scmp.ne.s32.totalorder %s29_s19, %s2285_s27  ;;  %p2291_p5 = scmp.lt.s32.totalorder %s2285_s27, %s2285_s27 }
   0xc   :  { %p2292_p6 = por %p2291_p5, %p2290_p4 }
   0xe   :  { %p2293_p7 = pnand %p2292_p6, %p2286_p3 }
  0x10   :  { %2296 = shalt.err (!%p2293_p7)
}
  0x11   :  { %s2348_s28 = smov 128   ;;  %s2349_s29 = smov 8  }
  0x12   :  { %34 = dma.hbm_to_vmem [thread:$0]  %s2744_s0, 256, %s29_s19, [#allocation4], %s2348_s28, %s2348_s28, %s2349_s29  }
  0x13   :  { %s2350_s17 = smov [#allocation6]   ;;  %s2297_s22 = scalar_lea.hbm %s2746_s2, 128 }
  0x14   :  { %s43_s18 = sshll.u32 %s2350_s17, 4  ;;  %p2298_p8 = scmp.ne.s32.totalorder %s2746_s2, %s2297_s22  ;;  %s44_s18 = int_to_ptr.vmem [resolvable:$true] %s43_s18 }
  0x15   :  { %p2301_p9 = scmp.lt.u32.totalorder %s2297_s22, %s2746_s2 }
  0x17   :  { %p2303_p10 = pnand %p2301_p9, %p2298_p8 }
  0x19   :  { %2306 = shalt.err (!%p2303_p10)
}
  0x1a   :  { %s2307_s27 = scalar_lea.vmem %s44_s18, 128  ;;  %p2312_p12 = scmp.lt.s32.totalorder %s44_s18, %s44_s18 }
  0x1b   :  { %p2308_p11 = scmp.ne.s32.totalorder %s44_s18, %s2307_s27  ;;  %p2313_p13 = scmp.lt.s32.totalorder %s2307_s27, %s2307_s27 }
  0x1d   :  { %p2314_p0 = por %p2313_p13, %p2312_p12 }
  0x1f   :  { %p2315_p1 = pnand %p2314_p0, %p2308_p11 }
  0x21   :  { %2318 = shalt.err (!%p2315_p1)
}
  0x22   :  { %46 = dma.hbm_to_vmem [thread:$0]  %s2746_s2, 128, %s44_s18, [#allocation7]  }
  0x23   :  { %2341 = dma.done.wait [#allocation4], 256  }
  0x24   :  { %2342 = vsyncadd [#allocation4], 4294967040 }
  0x25   :  { %2343 = dma.done.wait [#allocation7], 128  }
  0x26   :  { %2344 = vsyncadd [#allocation7], 4294967168  ;;  %vm91_vm0 = vcmask 261120   ;;  %v80_v0 = vld [vmem:[%s2747_s3] sm:$0xff]  ;;  %v81_v1 = vld [vmem:[%s2747_s3 + $0x8] sm:$0xff]  ;;  %v2351_v8 = vmov 0.0  }
  0x27   :  { %v82_v2 = vld [vmem:[%s2747_s3 + $0x10] sm:$0xff]  ;;  %v2175_v3 = vpack.c.bf16 %v81_v1, %v80_v0  ;;  %v83_v4 = vld [vmem:[%s2747_s3 + $0x18] sm:$0xff]  ;;  %2064 = vmatprep.subr.mxu0 %v2351_v8  ;;  %vm2352_vm1 = vmmov 0   ;;  %v1941_v9 = vld [vmem:[%s2748_s4] ss:$0 sm:$0xff]  ;;  %s2353_s24 = smov 96  }
  0x28   :  { %v2486_v5 = vld [vmem:[#allocation3] sm:$0xff]  ;;  %v2179_v6 = vpack.c.bf16 %v83_v4, %v82_v2  ;;  %v2490_v7 = vld [vmem:[#allocation3 + $0x8] sm:$0xff]  ;;  %2066 = vmatprep.mubr.msk.f32.mxu0 %vm2352_vm1, %v2351_v8  ;;  %s2354_s25 = smov 120   ;;  %s2355_s26 = smov 88   ;;  %vm184_vm2 = vcmask 64512   ;;  %v79_v31 = vld [vmem:[#allocation6] sm:$0xff] }
  0x29   :  { %2051 = vmatprep.mubr.msk.f32.mxu1 %vm91_vm0, %v2486_v5  ;;  %2176 = vmatprep.subr.bf16.mxu1 %v2175_v3  ;;  %s2356_s27 = smov 80   ;;  %s2357_s0 = smov 112   ;;  %v1944_v32 = vld [vmem:[%s2745_s1] ss:$0 sm:$0xff]  ;;  %v1957_v45 = vld [vmem:[%s2745_s1 + $0x1] ss:$0 sm:$0xff] }
  0x2a   :  { %2178 = vmatpush3.bf16.msra.mxu1 %v2175_v3  ;;  %s2358_s4 = smov 72   ;;  %s2359_s19 = smov 104   ;;  %v180_v33 = vadd.f32 %v1944_v32, %v79_v31  ;;  %v866_v50 = vadd.f32 %v1957_v45, %v79_v31  ;;  %vm517_vm3 = vcmask 130112   ;;  %vm688_vm4 = vcmask 195712  }
  0x2b   :  { %2180 = vmatprep.subr.bf16.mxu1 %v2179_v6  ;;  %s2360_s30 = smov 64   ;;  %s2361_s16 = smov 56   ;;  %vm859_vm5 = vcmask 261312   ;;  %vm1793_vm6 = vcmask 523264  }
  0x2c   :  { %s2362_s1 = smov 40   ;;  %s2363_s23 = smov 48  }
  0x2d   :  { %s2364_s2 = smov 16   ;;  %s2365_s3 = smov 24  }
  0x2e   :  { %2182 = vmatpush3.bf16.msra.mxu1 %v2179_v6  ;;  %s2366_s18 = smov [#allocation8]  }
  0x2f   :  { %2054 = vmatprep.subr.mxu1 %v2351_v8 }
  0x31   :  { %2052 = vmatmul.mubr.msk.f32.vlgmr.msra.gmra.mrb[0].mxu1 %vm91_vm0, %v2490_v7 }
  0x32   :  { %2056 = vmatprep.mubr.msk.f32.mxu1 %vm2352_vm1, %v2351_v8 }
 0x104   :  { %v2053_v10 = vpop.f32.mrb[0].mxu1 }
 0x105   :  { %v164_v11 = vpop.f32.mrb[1].mxu1  ;;  %v2510_v14 = vadd.f32 %v2053_v10, %v1941_v9 }
 0x106   :  { %v2503_v12 = vadd.f32 %v1941_v9, %v164_v11 }
 0x107   :  { %v174_v15 = vmul.f32 0.35355338, %v2510_v14 }
 0x108   :  { %182 = vrot.lane.b32.xlu0 %v2503_v12, %s2353_s24  ;;  %v173_v13 = vmul.f32 0.35355338, %v2503_v12 }
 0x10a   :  { %348 = vrot.lane.b32.xlu1 %v173_v13, %s2354_s25 }
 0x10c   :  { %350 = vrot.lane.b32.xlu0 %v2503_v12, %s2355_s26 }
 0x10e   :  { %521 = vrot.lane.b32.xlu1 %v2503_v12, %s2356_s27 }
 0x110   :  { %519 = vrot.lane.b32.xlu0 %v173_v13, %s2357_s0 }
 0x112   :  { %692 = vrot.lane.b32.xlu1 %v2503_v12, %s2358_s4 }
 0x114   :  { %690 = vrot.lane.b32.xlu0 %v173_v13, %s2359_s19 }
 0x116   :  { %868 = vrot.lane.b32.xlu1 %v2510_v14, %s2353_s24  ;;  %s1928_s24 = sshll.u32 %s2366_s18, 4  ;;  %s1929_s24 = int_to_ptr.vmem [resolvable:$true] %s1928_s24 }
 0x117   :  { %p2324_p3 = scmp.lt.s32.totalorder %s1929_s24, %s1929_s24 }
 0x118   :  { %1035 = vrot.lane.b32.xlu0 %v2510_v14, %s2355_s26 }
 0x11a   :  { %1033 = vrot.lane.b32.xlu1 %v174_v15, %s2354_s25  ;;  %s2319_s25 = scalar_lea.vmem %s1929_s24, 256 }
 0x11b   :  { %p2320_p2 = scmp.ne.s32.totalorder %s1929_s24, %s2319_s25  ;;  %p2325_p4 = scmp.lt.s32.totalorder %s2319_s25, %s2319_s25 }
 0x11c   :  { %1205 = vrot.lane.b32.xlu0 %v2510_v14, %s2356_s27 }
 0x11d   :  { %p2326_p5 = por %p2325_p4, %p2324_p3 }
 0x11e   :  { %1203 = vrot.lane.b32.xlu1 %v174_v15, %s2357_s0 }
 0x11f   :  { %p2327_p6 = pnand %p2326_p5, %p2320_p2 }
 0x120   :  { %1375 = vrot.lane.b32.xlu0 %v2510_v14, %s2358_s4 }
 0x122   :  { %1373 = vrot.lane.b32.xlu1 %v174_v15, %s2359_s19 }
 0x124   :  { %271 = vrot.lane.b32.xlu0 %v2503_v12, %s2360_s30 }
 0x126   :  { %437 = vrot.lane.b32.xlu1 %v2503_v12, %s2361_s16 }
 0x17a   :  { %v183_v16 = vpop.permute.xlu0 %182 }
 0x17b   :  { %2055 = vmatpush3.xpose.msk.msra.mxu1 %vm184_vm2, %v183_v16 }
 0x17c   :  { %v349_v17 = vpop.permute.xlu1 %348  ;;  %2059 = vmatprep.subr.mxu1 %v2351_v8 }
 0x17e   :  { %v351_v18 = vpop.permute.xlu0 %350  ;;  %2057 = vmatmul.mubr.msk.f32.vlgmr.msra.gmra.mrb[2].mxu1 %vm184_vm2, %v173_v13 }
 0x17f   :  { %2065 = vmatpush3.xpose.msk.msra.mxu0 %vm184_vm2, %v351_v18  ;;  %2061 = vmatprep.mubr.msk.f32.mxu1 %vm2352_vm1, %v2351_v8 }
 0x180   :  { %v522_v19 = vpop.permute.xlu1 %521  ;;  %2074 = vmatprep.subr.mxu0 %v2351_v8 }
 0x182   :  { %v520_v20 = vpop.permute.xlu0 %519  ;;  %2067 = vmatmul.mubr.msk.f32.vlgmr.msra.gmra.mrb[0].mxu0 %vm184_vm2, %v349_v17 }
 0x183   :  { %2075 = vmatpush3.xpose.msk.msra.mxu0 %vm184_vm2, %v522_v19  ;;  %2076 = vmatprep.mubr.msk.f32.mxu0 %vm2352_vm1, %v2351_v8 }
 0x184   :  { %v693_v21 = vpop.permute.xlu1 %692  ;;  %2084 = vmatprep.subr.mxu0 %v2351_v8 }
 0x186   :  { %v691_v22 = vpop.permute.xlu0 %690  ;;  %2077 = vmatmul.mubr.msk.f32.vlgmr.msra.gmra.mrb[2].mxu0 %vm184_vm2, %v520_v20 }
 0x187   :  { %2085 = vmatpush3.xpose.msk.msra.mxu0 %vm184_vm2, %v693_v21  ;;  %2086 = vmatprep.mubr.msk.f32.mxu0 %vm2352_vm1, %v2351_v8 }
 0x188   :  { %v869_v23 = vpop.permute.xlu1 %868  ;;  %2094 = vmatprep.subr.mxu0 %v2351_v8 }
 0x18a   :  { %v1036_v24 = vpop.permute.xlu0 %1035  ;;  %2087 = vmatmul.mubr.msk.f32.vlgmr.msra.gmra.mrb[4].mxu0 %vm184_vm2, %v691_v22 }
 0x18b   :  { %2095 = vmatpush3.xpose.msk.msra.mxu0 %vm184_vm2, %v869_v23  ;;  %2096 = vmatprep.mubr.msk.f32.mxu0 %vm2352_vm1, %v2351_v8 }
 0x18c   :  { %2104 = vmatprep.subr.mxu0 %v2351_v8  ;;  %v1034_v25 = vpop.permute.xlu1 %1033 }
 0x18e   :  { %v1206_v26 = vpop.permute.xlu0 %1205  ;;  %2097 = vmatmul.mubr.msk.f32.vlgmr.msra.gmra.mrb[6].mxu0 %vm184_vm2, %v174_v15 }
 0x18f   :  { %2105 = vmatpush3.xpose.msk.msra.mxu0 %vm184_vm2, %v1036_v24  ;;  %2106 = vmatprep.mubr.msk.f32.mxu0 %vm2352_vm1, %v2351_v8 }
 0x190   :  { %2114 = vmatprep.subr.mxu0 %v2351_v8  ;;  %v1204_v28 = vpop.permute.xlu1 %1203 }
 0x192   :  { %v1376_v27 = vpop.permute.xlu0 %1375  ;;  %2107 = vmatmul.mubr.msk.f32.vlgmr.msra.gmra.mrb[8].mxu0 %vm184_vm2, %v1034_v25 }
 0x193   :  { %2115 = vmatpush3.xpose.msk.msra.mxu0 %vm184_vm2, %v1206_v26  ;;  %2116 = vmatprep.mubr.msk.f32.mxu0 %vm2352_vm1, %v2351_v8 }
 0x194   :  { %2124 = vmatprep.subr.mxu0 %v2351_v8  ;;  %v1374_v30 = vpop.permute.xlu1 %1373 }
 0x196   :  { %v272_v29 = vpop.permute.xlu0 %271  ;;  %2117 = vmatmul.mubr.msk.f32.vlgmr.msra.gmra.mrb[10].mxu0 %vm184_vm2, %v1204_v28 }
 0x197   :  { %2060 = vmatpush3.msra.mxu1 %v272_v29  ;;  %2125 = vmatpush3.xpose.msk.msra.mxu0 %vm184_vm2, %v1376_v27 }
 0x198   :  { %2126 = vmatprep.mubr.msk.f32.mxu0 %vm2352_vm1, %v2351_v8  ;;  %2069 = vmatprep.subr.mxu1 %v2351_v8  ;;  %v2577_v4 = vpop.permute.xlu1 %437 }
 0x19a   :  { %2127 = vmatmul.mubr.msk.f32.vlgmr.msra.gmra.mrb[12].mxu0 %vm184_vm2, %v1374_v30 }
 0x251   :  { %v256_v34 = vpop.f32.mrb[2].mxu1 }
 0x252   :  { %v257_v35 = vadd.f32 %v256_v34, %v180_v33  ;;  %v2058_v36 = vpop.f32.mrb[3].mxu1 }
 0x254   :  { %v260_v37 = vsel %vm184_vm2, %v257_v35, -inf }
 0x255   :  { %v422_v38 = vpop.f32.mrb[0].mxu0  ;;  %261 = vmax.xlane.f32.xlu0 %v260_v37 }
 0x256   :  { %v423_v39 = vadd.f32 %v422_v38, %v180_v33  ;;  %v2068_v40 = vpop.f32.mrb[1].mxu0 }
 0x258   :  { %v426_v41 = vsel %vm184_vm2, %v423_v39, -inf }
 0x259   :  { %427 = vmax.xlane.f32.xlu1 %v426_v41  ;;  %v593_v42 = vpop.f32.mrb[2].mxu0 }
 0x25a   :  { %v594_v43 = vadd.f32 %v593_v42, %v180_v33  ;;  %v2078_v44 = vpop.f32.mrb[3].mxu0 }
 0x25c   :  { %v597_v46 = vsel %vm184_vm2, %v594_v43, -inf }
 0x25d   :  { %v764_v47 = vpop.f32.mrb[4].mxu0  ;;  %598 = vmax.xlane.f32.xlu0 %v597_v46 }
 0x25e   :  { %v765_v48 = vadd.f32 %v764_v47, %v180_v33  ;;  %v2088_v49 = vpop.f32.mrb[5].mxu0 }
 0x260   :  { %v768_v51 = vsel %vm184_vm2, %v765_v48, -inf }
 0x261   :  { %v941_v52 = vpop.f32.mrb[6].mxu0  ;;  %769 = vmax.xlane.f32.xlu0 %v768_v51 }
 0x262   :  { %v942_v53 = vadd.f32 %v941_v52, %v866_v50  ;;  %v2098_v54 = vpop.f32.mrb[7].mxu0 }
 0x264   :  { %v945_v55 = vsel %vm184_vm2, %v942_v53, -inf }
 0x265   :  { %946 = vmax.xlane.f32.xlu1 %v945_v55  ;;  %v1107_v56 = vpop.f32.mrb[8].mxu0 }
 0x266   :  { %v1108_v57 = vadd.f32 %v1107_v56, %v866_v50  ;;  %v2108_v58 = vpop.f32.mrb[9].mxu0 }
 0x268   :  { %v1111_v59 = vsel %vm184_vm2, %v1108_v57, -inf }
 0x269   :  { %v1277_v60 = vpop.f32.mrb[10].mxu0  ;;  %1112 = vmax.xlane.f32.xlu0 %v1111_v59 }
 0x26a   :  { %v1278_v61 = vadd.f32 %v1277_v60, %v866_v50  ;;  %v2118_v62 = vpop.f32.mrb[11].mxu0 }
 0x26c   :  { %v1281_v63 = vsel %vm184_vm2, %v1278_v61, -inf }
 0x26d   :  { %1282 = vmax.xlane.f32.xlu1 %v1281_v63  ;;  %v1447_v0 = vpop.f32.mrb[12].mxu0 }
 0x26e   :  { %v1448_v1 = vadd.f32 %v1447_v0, %v866_v50  ;;  %v2128_v2 = vpop.f32.mrb[13].mxu0 }
 0x270   :  { %v1451_v3 = vsel %vm184_vm2, %v1448_v1, -inf }
 0x271   :  { %1452 = vmax.xlane.f32.xlu0 %v1451_v3 }
 0x27e   :  { %779 = vrot.lane.b32.xlu1 %v2503_v12, %s2362_s1 }
 0x287   :  { %608 = vrot.lane.b32.xlu0 %v2503_v12, %s2363_s23 }
 0x2e2   :  { %v262_v6 = vpop.xlane.xlu0 %261 }
 0x2e3   :  { %v263_v9 = vsub.f32 %v257_v35, %v262_v6 }
 0x2e5   :  { %v264_v10 = vmul.f32 1.442695, %v263_v9 }
 0x2e6   :  { %v428_v11 = vpop.xlane.xlu1 %427 }
 0x2e7   :  { %2235 = vpow2.f32 %v264_v10  ;;  %v429_v13 = vsub.f32 %v423_v39, %v428_v11 }
 0x2e9   :  { %v430_v15 = vmul.f32 1.442695, %v429_v13 }
 0x2ea   :  { %v599_v16 = vpop.xlane.xlu0 %598 }
 0x2eb   :  { %2237 = vpow2.f32 %v430_v15  ;;  %v600_v17 = vsub.f32 %v594_v43, %v599_v16 }
 0x2ed   :  { %v601_v18 = vmul.f32 1.442695, %v600_v17 }
 0x2ee   :  { %v770_v19 = vpop.xlane.xlu0 %769 }
 0x2ef   :  { %2239 = vpow2.f32 %v601_v18  ;;  %v771_v20 = vsub.f32 %v765_v48, %v770_v19 }
 0x2f1   :  { %v2236_v21 = vpop.eup %2235  ;;  %v772_v22 = vmul.f32 1.442695, %v771_v20 }
 0x2f2   :  { %v266_v12 = vsel %vm184_vm2, %v2236_v21, 0.0  ;;  %v947_v29 = vpop.xlane.xlu1 %946 }
 0x2f3   :  { %2241 = vpow2.f32 %v772_v22  ;;  %267 = vadd.xlane.f32.xlu1 %v266_v12  ;;  %v948_v30 = vsub.f32 %v942_v53, %v947_v29 }
 0x2f5   :  { %v2238_v23 = vpop.eup %2237  ;;  %v949_v34 = vmul.f32 1.442695, %v948_v30  ;;  %v1547_v30 = vld [vmem:[%s2749_s5 + $0x10] sm:$0xff] }
 0x2f6   :  { %v432_v24 = vsel %vm184_vm2, %v2238_v23, 0.0  ;;  %v1113_v31 = vpop.xlane.xlu0 %1112 }
 0x2f7   :  { %433 = vadd.xlane.f32.xlu0 %v432_v24  ;;  %v1114_v33 = vsub.f32 %v1108_v57, %v1113_v31  ;;  %2243 = vpow2.f32 %v949_v34  ;;  %v1548_v31 = vld [vmem:[%s2749_s5 + $0x18] sm:$0xff] }
 0x2f9   :  { %v2240_v25 = vpop.eup %2239  ;;  %v1115_v37 = vmul.f32 1.442695, %v1114_v33 }
 0x2fa   :  { %v603_v26 = vsel %vm184_vm2, %v2240_v25, 0.0  ;;  %v1283_v32 = vpop.xlane.xlu1 %1282 }
 0x2fb   :  { %604 = vadd.xlane.f32.xlu1 %v603_v26  ;;  %v1284_v35 = vsub.f32 %v1278_v61, %v1283_v32  ;;  %2245 = vpow2.f32 %v1115_v37  ;;  %v1546_v26 = vld [vmem:[%s2749_s5 + $0x8] sm:$0xff]  ;;  %v2187_v32 = vpack.c.bf16 %v1548_v31, %v1547_v30 }
 0x2fd   :  { %v2582_v27 = vpop.eup %2241  ;;  %v1285_v38 = vmul.f32 1.442695, %v1284_v35 }
 0x2fe   :  { %v774_v28 = vsel %vm184_vm2, %v2582_v27, 0.0  ;;  %v1453_v36 = vpop.xlane.xlu0 %1452  ;;  %v780_v49 = vpop.permute.xlu1 %779 }
 0x2ff   :  { %775 = vadd.xlane.f32.xlu0 %v774_v28  ;;  %v1454_v39 = vsub.f32 %v1448_v1, %v1453_v36  ;;  %2247 = vpow2.f32 %v1285_v38 }
 0x301   :  { %v1455_v40 = vmul.f32 1.442695, %v1454_v39  ;;  %v2244_v41 = vpop.eup %2243 }
 0x302   :  { %v951_v43 = vsel %vm184_vm2, %v2244_v41, 0.0  ;;  %v609_v50 = vpop.permute.xlu0 %608 }
 0x303   :  { %2249 = vpow2.f32 %v1455_v40 }
 0x305   :  { %v2590_v42 = vpop.eup %2245 }
 0x306   :  { %v1117_v46 = vsel %vm184_vm2, %v2590_v42, 0.0 }
 0x309   :  { %v2593_v44 = vpop.eup %2247 }
 0x30a   :  { %v1287_v45 = vsel %vm184_vm2, %v2593_v44, 0.0 }
 0x30c   :  { %1122 = vrot.lane.b32.xlu1 %v2510_v14, %s2361_s16 }
 0x30d   :  { %v2599_v47 = vpop.eup %2249 }
 0x30e   :  { %v1457_v48 = vsel %vm184_vm2, %v2599_v47, 0.0 }
 0x315   :  { %956 = vrot.lane.b32.xlu0 %v2510_v14, %s2360_s30 }
 0x330   :  { %952 = vadd.xlane.f32.xlu1 %v951_v43 }
 0x334   :  { %1288 = vadd.xlane.f32.xlu1 %v1287_v45  ;;  %1118 = vadd.xlane.f32.xlu0 %v1117_v46 }
 0x338   :  { %1458 = vadd.xlane.f32.xlu1 %v1457_v48 }
 0x349   :  { %1462 = vrot.lane.b32.xlu1 %v2510_v14, %s2362_s1 }
 0x34a   :  { %1292 = vrot.lane.b32.xlu0 %v2510_v14, %s2363_s23 }
 0x380   :  { %v268_v51 = vpop.xlane.xlu1 %267 }
 0x381   :  { %2251 = vrcp.f32 %v268_v51 }
 0x384   :  { %v434_v52 = vpop.xlane.xlu0 %433 }
 0x385   :  { %2253 = vrcp.f32 %v434_v52 }
 0x388   :  { %v605_v53 = vpop.xlane.xlu1 %604 }
 0x389   :  { %2255 = vrcp.f32 %v605_v53 }
 0x38b   :  { %v2252_v54 = vpop.eup %2251 }
 0x38c   :  { %v270_v55 = vmul.f32 %v2252_v54, %v2236_v21  ;;  %v776_v56 = vpop.xlane.xlu0 %775  ;;  %v1123_v63 = vpop.permute.xlu1 %1122 }
 0x38d   :  { %2257 = vrcp.f32 %v776_v56 }
 0x38e   :  { %2062 = vmatmul.mubr.msk.f32.vlgmr.msra.gmra.mrb[4].mxu1 %vm184_vm2, %v270_v55 }
 0x38f   :  { %v2254_v57 = vpop.eup %2253  ;;  %2070 = vmatpush3.msra.mxu1 %v2577_v4  ;;  %2071 = vmatprep.mubr.msk.f32.mxu1 %vm2352_vm1, %v2351_v8 }
 0x390   :  { %v436_v14 = vmul.f32 %v2254_v57, %v2238_v23  ;;  %2079 = vmatprep.subr.mxu1 %v2351_v8  ;;  %v957_v62 = vpop.permute.xlu0 %956 }
 0x392   :  { %2072 = vmatmul.mubr.msk.f32.vlgmr.msra.gmra.mrb[6].mxu1 %vm184_vm2, %v436_v14 }
 0x393   :  { %v2256_v58 = vpop.eup %2255  ;;  %2080 = vmatpush3.msra.mxu1 %v609_v50  ;;  %2081 = vmatprep.mubr.msk.f32.mxu1 %vm2352_vm1, %v2351_v8 }
 0x394   :  { %v607_v59 = vmul.f32 %v2256_v58, %v2240_v25  ;;  %2089 = vmatprep.subr.mxu1 %v2351_v8  ;;  %v1545_v25 = vld [vmem:[%s2749_s5] sm:$0xff] }
 0x395   :  { %v2183_v28 = vpack.c.bf16 %v1546_v26, %v1545_v25  ;;  %v1974_v26 = vld [vmem:[%s2752_s8] ss:$0 sm:$0xff] }
 0x396   :  { %2082 = vmatmul.mubr.msk.f32.vlgmr.msra.gmra.mrb[8].mxu1 %vm184_vm2, %v607_v59 }
 0x397   :  { %v2258_v60 = vpop.eup %2257  ;;  %2090 = vmatpush3.msra.mxu1 %v780_v49  ;;  %2091 = vmatprep.mubr.msk.f32.mxu1 %vm2352_vm1, %v2351_v8 }
 0x398   :  { %v778_v61 = vmul.f32 %v2258_v60, %v2582_v27  ;;  %2099 = vmatprep.subr.mxu1 %v2351_v8  ;;  %2184 = vmatprep.subr.bf16.mxu0 %v2183_v28 }
 0x399   :  { %2186 = vmatpush3.bf16.msra.mxu0 %v2183_v28 }
 0x39a   :  { %2092 = vmatmul.mubr.msk.f32.vlgmr.msra.gmra.mrb[10].mxu1 %vm184_vm2, %v778_v61  ;;  %2188 = vmatprep.subr.bf16.mxu0 %v2187_v32 }
 0x39b   :  { %2100 = vmatpush3.msra.mxu1 %v957_v62  ;;  %2101 = vmatprep.mubr.msk.f32.mxu1 %vm2352_vm1, %v2351_v8 }
 0x39c   :  { %2109 = vmatprep.subr.mxu1 %v2351_v8 }
 0x39d   :  { %2190 = vmatpush3.bf16.msra.mxu0 %v2187_v32 }
 0x3bd   :  { %v953_v0 = vpop.xlane.xlu1 %952 }
 0x3be   :  { %2259 = vrcp.f32 %v953_v0  ;;  %v1685_v0 = vld [vmem:[%s2753_s9 + $0x8] sm:$0xff] }
 0x3c1   :  { %v1289_v1 = vpop.xlane.xlu1 %1288  ;;  %v1119_v2 = vpop.xlane.xlu0 %1118 }
 0x3c2   :  { %2261 = vrcp.f32 %v1119_v2  ;;  %v1686_v2 = vld [vmem:[%s2753_s9 + $0x10] sm:$0xff] }
 0x3c3   :  { %2263 = vrcp.f32 %v1289_v1 }
 0x3c5   :  { %v1459_v3 = vpop.xlane.xlu1 %1458  ;;  %v1293_v13 = vpop.permute.xlu0 %1292 }
 0x3c6   :  { %2265 = vrcp.f32 %v1459_v3  ;;  %v1687_v3 = vld [vmem:[%s2753_s9 + $0x18] sm:$0xff] }
 0x3c8   :  { %v2260_v4 = vpop.eup %2259 }
 0x3c9   :  { %v955_v6 = vmul.f32 %v2260_v4, %v2244_v41  ;;  %v1463_v17 = vpop.permute.xlu1 %1462  ;;  %v2195_v4 = vpack.c.bf16 %v1687_v3, %v1686_v2  ;;  %v1981_v2 = vld [vmem:[%s2757_s13] ss:$0 sm:$0xff] }
 0x3cb   :  { %2102 = vmatmul.mubr.msk.f32.vlgmr.msra.gmra.mrb[12].mxu1 %vm184_vm2, %v955_v6  ;;  %v1778_v6 = vld [vmem:[%s2755_s11] sm:$0xff] }
 0x3cc   :  { %2110 = vmatpush3.msra.mxu1 %v1123_v63  ;;  %2111 = vmatprep.mubr.msk.f32.mxu1 %vm2352_vm1, %v2351_v8  ;;  %v2262_v9 = vpop.eup %2261 }
 0x3cd   :  { %2119 = vmatprep.subr.mxu1 %v2351_v8  ;;  %v1121_v10 = vmul.f32 %v2262_v9, %v2590_v42  ;;  %v2264_v11 = vpop.eup %2263  ;;  %v1779_v9 = vld [vmem:[%s2755_s11 + $0x8] sm:$0xff] }
 0x3ce   :  { %v1291_v15 = vmul.f32 %v2264_v11, %v2593_v44  ;;  %v2199_v11 = vpack.c.bf16 %v1779_v9, %v1778_v6  ;;  %v1982_v9 = vld [vmem:[%s2758_s14] ss:$0 sm:$0xff] }
 0x3cf   :  { %2112 = vmatmul.mubr.msk.f32.vlgmr.msra.gmra.mrb[14].mxu1 %vm184_vm2, %v1121_v10  ;;  %v1780_v10 = vld [vmem:[%s2755_s11 + $0x10] sm:$0xff] }
 0x3d0   :  { %2120 = vmatpush3.msra.mxu1 %v1293_v13  ;;  %2121 = vmatprep.mubr.msk.f32.mxu1 %vm2352_vm1, %v2351_v8  ;;  %v2266_v16 = vpop.eup %2265  ;;  %v1781_v13 = vld [vmem:[%s2755_s11 + $0x18] sm:$0xff] }
 0x3d1   :  { %2129 = vmatprep.subr.mxu1 %v2351_v8  ;;  %v1461_v18 = vmul.f32 %v2266_v16, %v2599_v47  ;;  %v1970_v47 = vld [vmem:[%s2750_s6] ss:$0 sm:$0xff]  ;;  %2200 = vmatprep.subr.bf16.mxu0 %v2199_v11 }
 0x3d2   :  { %v1782_v16 = vld [vmem:[%s2755_s11 + $0x20] sm:$0xff] }
 0x3d3   :  { %2122 = vmatmul.mubr.msk.f32.vlgmr.msra.gmra.mrb[16].mxu1 %vm184_vm2, %v1291_v15  ;;  %v2203_v15 = vpack.c.bf16 %v1781_v13, %v1780_v10 }
 0x3d4   :  { %2130 = vmatpush3.msra.mxu1 %v1463_v17  ;;  %2131 = vmatprep.mubr.msk.f32.mxu1 %vm2352_vm1, %v2351_v8  ;;  %v1783_v17 = vld [vmem:[%s2755_s11 + $0x28] sm:$0xff] }
 0x3d7   :  { %2132 = vmatmul.mubr.msk.f32.vlgmr.msra.gmra.mrb[18].mxu1 %vm184_vm2, %v1461_v18  ;;  %v2207_v18 = vpack.c.bf16 %v1783_v17, %v1782_v16 }
 0x461   :  { %v343_v19 = vpop.f32.mrb[4].mxu1 }
 0x462   :  { %347 = vst.msk [vmem:[#allocation2] sm:$0xff] %vm184_vm2, %v343_v19  ;;  %v2063_v20 = vpop.f32.mrb[5].mxu1 }
 0x465   :  { %v509_v21 = vpop.f32.mrb[6].mxu1 }
 0x466   :  { %514 = vrot.lane.b32.xlu0 %v509_v21, %s2349_s29  ;;  %v2073_v22 = vpop.f32.mrb[7].mxu1 }
 0x469   :  { %v680_v12 = vpop.f32.mrb[8].mxu1 }
 0x46a   :  { %685 = vrot.lane.b32.xlu1 %v680_v12, %s2364_s2  ;;  %v2083_v23 = vpop.f32.mrb[9].mxu1 }
 0x46d   :  { %v851_v24 = vpop.f32.mrb[10].mxu1 }
 0x46e   :  { %856 = vrot.lane.b32.xlu1 %v851_v24, %s2365_s3  ;;  %v2093_v8 = vpop.f32.mrb[11].mxu1 }
 0x46f   :  { %v1973_v8 = vld [vmem:[%s2751_s7] ss:$0 sm:$0xff] }
 0x49e   :  { %v1028_v27 = vpop.f32.mrb[12].mxu1 }
 0x49f   :  { %1032 = vst.msk [vmem:[#allocation2 + $0x8] sm:$0xff] %vm184_vm2, %v1028_v27  ;;  %v2103_v29 = vpop.f32.mrb[13].mxu1 }
 0x4a2   :  { %v1194_v33 = vpop.f32.mrb[14].mxu1 }
 0x4a3   :  { %1199 = vrot.lane.b32.xlu0 %v1194_v33, %s2349_s29  ;;  %v2113_v34 = vpop.f32.mrb[15].mxu1  ;;  %v1784_v33 = vld [vmem:[%s2755_s11 + $0x30] sm:$0xff] }
 0x4a4   :  { %v1785_v34 = vld [vmem:[%s2755_s11 + $0x38] sm:$0xff] }
 0x4a6   :  { %v1364_v35 = vpop.f32.mrb[16].mxu1 }
 0x4a7   :  { %1369 = vrot.lane.b32.xlu0 %v1364_v35, %s2364_s2  ;;  %v2123_v36 = vpop.f32.mrb[17].mxu1  ;;  %v2211_v35 = vpack.c.bf16 %v1785_v34, %v1784_v33 }
 0x4a8   :  { %v1975_v36 = vld [vmem:[%s2754_s10] ss:$0 sm:$0xff] }
 0x4aa   :  { %v1534_v37 = vpop.f32.mrb[18].mxu1 }
 0x4ab   :  { %1539 = vrot.lane.b32.xlu1 %v1534_v37, %s2365_s3  ;;  %v2133_v38 = vpop.f32.mrb[19].mxu1 }
 0x4d8   :  { %v515_v39 = vpop.permute.xlu0 %514 }
 0x4d9   :  { %518 = vst.msk [vmem:[#allocation2] sm:$0xff] %vm517_vm3, %v515_v39 }
 0x4dc   :  { %v686_v40 = vpop.permute.xlu1 %685 }
 0x4dd   :  { %689 = vst.msk [vmem:[#allocation2] sm:$0xff] %vm688_vm4, %v686_v40 }
 0x4e0   :  { %v857_v41 = vpop.permute.xlu1 %856 }
 0x4e1   :  { %860 = vst.msk [vmem:[#allocation2] sm:$0xff] %vm859_vm5, %v857_v41 }
 0x4e8   :  { %v1543_v42 = vld [vmem:[#allocation2] sm:$0xff] }
 0x4e9   :  { %2142 = vmatprep.mubr.msk.f32.mxu0 %vm91_vm0, %v1543_v42 }
 0x515   :  { %v1200_v43 = vpop.permute.xlu0 %1199 }
 0x516   :  { %1202 = vst.msk [vmem:[#allocation2 + $0x8] sm:$0xff] %vm517_vm3, %v1200_v43  ;;  %v1978_v43 = vld [vmem:[%s2756_s12] ss:$0 sm:$0xff] }
 0x519   :  { %v1370_v44 = vpop.permute.xlu0 %1369 }
 0x51a   :  { %1372 = vst.msk [vmem:[#allocation2 + $0x8] sm:$0xff] %vm688_vm4, %v1370_v44 }
 0x51d   :  { %v1540_v45 = vpop.permute.xlu1 %1539 }
 0x51e   :  { %1542 = vst.msk [vmem:[#allocation2 + $0x8] sm:$0xff] %vm859_vm5, %v1540_v45 }
 0x525   :  { %v1544_v46 = vld [vmem:[#allocation2 + $0x8] sm:$0xff] }
 0x526   :  { %2143 = vmatmul.mubr.msk.f32.vlgmr.msra.gmra.mrb[14].mxu0 %vm91_vm0, %v1544_v46 }
 0x527   :  { %2202 = vmatpush3.bf16.msra.mxu0 %v2199_v11 }
 0x528   :  { %2204 = vmatprep.subr.bf16.mxu0 %v2203_v15 }
 0x52b   :  { %2206 = vmatpush3.bf16.msra.mxu0 %v2203_v15 }
 0x52c   :  { %2208 = vmatprep.subr.bf16.mxu0 %v2207_v18 }
 0x52f   :  { %2210 = vmatpush3.bf16.msra.mxu0 %v2207_v18 }
 0x530   :  { %2212 = vmatprep.subr.bf16.mxu0 %v2211_v35 }
 0x533   :  { %2214 = vmatpush3.bf16.msra.mxu0 %v2211_v35 }
 0x5f9   :  { %v2144_v48 = vpop.f32.mrb[14].mxu0 }
 0x5fa   :  { %v1634_v49 = vadd.f32 %v2144_v48, %v1970_v47  ;;  %v1628_v50 = vpop.f32.mrb[15].mxu0 }
 0x5fb   :  { %v1629_v51 = vadd.f32 %v1970_v47, %v1628_v50 }
 0x5fc   :  { %v1638_v52 = vadd.f32 %v1634_v49, %v2490_v7 }
 0x5fd   :  { %v1637_v53 = vadd.f32 %v1629_v51, %v2486_v5  ;;  %v1684_v5 = vld [vmem:[%s2753_s9] sm:$0xff] }
 0x5fe   :  { %v1644_v54 = vsel %vm91_vm0, %v1638_v52, 0.0  ;;  %v2191_v1 = vpack.c.bf16 %v1685_v0, %v1684_v5 }
 0x5ff   :  { %1645 = vadd.xlane.f32.xlu1 %v1644_v54  ;;  %v1641_v55 = vsel %vm91_vm0, %v1637_v53, 0.0 }
 0x600   :  { %1642 = vadd.xlane.f32.xlu0 %v1641_v55  ;;  %2192 = vmatprep.subr.bf16.mxu1 %v2191_v1 }
 0x601   :  { %2194 = vmatpush3.bf16.msra.mxu1 %v2191_v1 }
 0x602   :  { %2196 = vmatprep.subr.bf16.mxu1 %v2195_v4 }
 0x605   :  { %2198 = vmatpush3.bf16.msra.mxu1 %v2195_v4 }
 0x68c   :  { %v1646_v56 = vpop.xlane.xlu1 %1645 }
 0x68d   :  { %v1649_v57 = vmul.f32 0.03125, %v1646_v56  ;;  %v1643_v14 = vpop.xlane.xlu0 %1642 }
 0x68e   :  { %v1648_v58 = vmul.f32 0.03125, %v1643_v14 }
 0x68f   :  { %v1651_v59 = vsub.f32 %v1638_v52, %v1649_v57 }
 0x690   :  { %v1650_v60 = vsub.f32 %v1637_v53, %v1648_v58 }
 0x691   :  { %v1653_v63 = vmul.f32 %v1651_v59, %v1651_v59 }
 0x692   :  { %v1652_v61 = vmul.f32 %v1650_v60, %v1650_v60 }
 0x693   :  { %v1657_v7 = vsel %vm91_vm0, %v1653_v63, 0.0 }
 0x694   :  { %v1654_v62 = vsel %vm91_vm0, %v1652_v61, 0.0 }
 0x695   :  { %1655 = vadd.xlane.f32.xlu0 %v1654_v62 }
 0x699   :  { %1658 = vadd.xlane.f32.xlu0 %v1657_v7 }
 0x722   :  { %v1656_v19 = vpop.xlane.xlu0 %1655 }
 0x723   :  { %v1660_v20 = vmul.f32 0.03125, %v1656_v19 }
 0x725   :  { %v1662_v21 = vadd.f32 1e-05, %v1660_v20 }
 0x726   :  { %v1659_v22 = vpop.xlane.xlu0 %1658 }
 0x727   :  { %2267 = vrsqrt.f32 %v1662_v21  ;;  %v1661_v12 = vmul.f32 0.03125, %v1659_v22 }
 0x729   :  { %v1663_v23 = vadd.f32 1e-05, %v1661_v12 }
 0x72b   :  { %2269 = vrsqrt.f32 %v1663_v23 }
 0x731   :  { %v2268_v24 = vpop.eup %2267 }
 0x732   :  { %v1666_v25 = vmul.f32 %v2268_v24, %v1650_v60 }
 0x734   :  { %v1674_v27 = vmul.f32 %v1973_v8, %v1666_v25 }
 0x735   :  { %v2270_v28 = vpop.eup %2269 }
 0x736   :  { %v1667_v29 = vmul.f32 %v2270_v28, %v1651_v59  ;;  %v1682_v30 = vadd.f32 %v1974_v26, %v1674_v27 }
 0x738   :  { %v1675_v31 = vmul.f32 %v1973_v8, %v1667_v29  ;;  %2153 = vmatprep.mubr.msk.f32.mxu1 %vm91_vm0, %v1682_v30 }
 0x73a   :  { %v1683_v32 = vadd.f32 %v1974_v26, %v1675_v31 }
 0x73c   :  { %2154 = vmatmul.mubr.msk.f32.vlgmr.msra.gmra.mrb[20].mxu1 %vm91_vm0, %v1683_v32 }
 0x80f   :  { %v2155_v37 = vpop.f32.mrb[20].mxu1 }
 0x810   :  { %v1773_v38 = vadd.f32 %v2155_v37, %v1975_v36  ;;  %v1767_v39 = vpop.f32.mrb[21].mxu1 }
 0x811   :  { %v1768_v40 = vadd.f32 %v1975_v36, %v1767_v39 }
 0x812   :  { %v1777_v42 = vmax.f32 %v1773_v38, 0.0 }
 0x813   :  { %v1776_v41 = vmax.f32 %v1768_v40, 0.0 }
 0x815   :  { %2172 = vmatprep.mubr.msk.f32.mxu0 %vm1793_vm6, %v1776_v41 }
 0x816   :  { %2173 = vmatmul.mubr.msk.f32.vlgmr.msra.gmra.mrb[16].mxu0 %vm1793_vm6, %v1777_v42 }
 0x8e9   :  { %v2174_v44 = vpop.f32.mrb[16].mxu0 }
 0x8ea   :  { %v1872_v45 = vadd.f32 %v2174_v44, %v1978_v43  ;;  %v1866_v46 = vpop.f32.mrb[17].mxu0 }
 0x8eb   :  { %v1867_v47 = vadd.f32 %v1978_v43, %v1866_v46 }
 0x8ec   :  { %v1876_v48 = vadd.f32 %v1872_v45, %v1683_v32 }
 0x8ed   :  { %v1875_v49 = vadd.f32 %v1867_v47, %v1682_v30 }
 0x8ee   :  { %v1882_v50 = vsel %vm91_vm0, %v1876_v48, 0.0 }
 0x8ef   :  { %1883 = vadd.xlane.f32.xlu0 %v1882_v50  ;;  %v1879_v51 = vsel %vm91_vm0, %v1875_v49, 0.0 }
 0x8f0   :  { %1880 = vadd.xlane.f32.xlu1 %v1879_v51 }
 0x97c   :  { %v1884_v52 = vpop.xlane.xlu0 %1883 }
 0x97d   :  { %v1886_v53 = vmul.f32 0.03125, %v1884_v52  ;;  %v1881_v54 = vpop.xlane.xlu1 %1880 }
 0x97e   :  { %v1885_v55 = vmul.f32 0.03125, %v1881_v54 }
 0x97f   :  { %v1888_v56 = vsub.f32 %v1876_v48, %v1886_v53 }
 0x980   :  { %v1887_v57 = vsub.f32 %v1875_v49, %v1885_v55 }
 0x981   :  { %v1890_v14 = vmul.f32 %v1888_v56, %v1888_v56 }
 0x982   :  { %v1889_v58 = vmul.f32 %v1887_v57, %v1887_v57 }
 0x983   :  { %v1894_v59 = vsel %vm91_vm0, %v1890_v14, 0.0 }
 0x984   :  { %1895 = vadd.xlane.f32.xlu0 %v1894_v59  ;;  %v1891_v60 = vsel %vm91_vm0, %v1889_v58, 0.0 }
 0x985   :  { %1892 = vadd.xlane.f32.xlu1 %v1891_v60 }
 0xa11   :  { %v1896_v61 = vpop.xlane.xlu0 %1895 }
 0xa12   :  { %v1898_v62 = vmul.f32 0.03125, %v1896_v61  ;;  %v1893_v63 = vpop.xlane.xlu1 %1892 }
 0xa13   :  { %v1897_v7 = vmul.f32 0.03125, %v1893_v63 }
 0xa14   :  { %v1900_v5 = vadd.f32 1e-05, %v1898_v62 }
 0xa15   :  { %v1899_v0 = vadd.f32 1e-05, %v1897_v7 }
 0xa16   :  { %2271 = vrsqrt.f32 %v1900_v5 }
 0xa17   :  { %2273 = vrsqrt.f32 %v1899_v0 }
 0xa20   :  { %v2272_v1 = vpop.eup %2271 }
 0xa21   :  { %v2274_v3 = vpop.eup %2273  ;;  %v1904_v4 = vmul.f32 %v2272_v1, %v1888_v56 }
 0xa22   :  { %v1903_v6 = vmul.f32 %v2274_v3, %v1887_v57 }
 0xa23   :  { %v1912_v10 = vmul.f32 %v1981_v2, %v1904_v4 }
 0xa24   :  { %v1911_v11 = vmul.f32 %v1981_v2, %v1903_v6 }
 0xa25   :  { %v1920_v13 = vadd.f32 %v1982_v9, %v1912_v10 }
 0xa26   :  { %v1919_v15 = vadd.f32 %v1982_v9, %v1911_v11 }
 0xa27   :  { %1922 = vst.msk [vmem:[#allocation8 + $0x8] sm:$0xff] %vm91_vm0, %v1920_v13 }
 0xa28   :  { %1921 = vst.msk [vmem:[#allocation8] sm:$0xff] %vm91_vm0, %v1919_v15 }
 0xa29   :  { %2330 = shalt.err (!%p2327_p6)
}
 0xa2a   :  { %s2331_s26 = scalar_lea.hbm %s2759_s15, 256 }
 0xa2b   :  { %p2332_p7 = scmp.ne.s32.totalorder %s2759_s15, %s2331_s26  ;;  %p2335_p8 = scmp.lt.u32.totalorder %s2331_s26, %s2759_s15 }
 0xa2d   :  { %p2337_p9 = pnand %p2335_p8, %p2332_p7 }
 0xa2f   :  { %2340 = shalt.err (!%p2337_p9)
}
 0xa30   :  { %1934 = dma.vmem_to_hbm [thread:$0]  %s1929_s24, 256, %s2759_s15, [#allocation5], %s2348_s28, %s2348_s28, %s2349_s29  }
 0xa31   :  { %2345 = dma.done.wait [#allocation5], 256  }
 0xa32   :  { %2346 = vsyncadd [#allocation5], 4294967040 }
 0xa33   :  { %1938 = vsyncpa [#allocation4], 1 }
 0xa34   :  { %1939 = vsyncpa [#allocation7], 1 }
 0xa35   :  { %1940 = vsyncpa [#allocation5], 1 }

</bundles_post_ra>
